<compile_context>
chip_gen: v7x
topology: tpu7x:2x2x1
jax: 0.10.0
libtpu: 0.0.40
codegen_flags: <defaults>
</compile_context>

<pallas_src>
import jax
import jax.numpy as jnp
from jax.experimental import pallas as pl
from jax.experimental.pallas import tpu as pltpu


def _round_up(x: int, m: int) -> int:
    return ((x + m - 1) // m) * m


def _vmem_limit_bytes() -> int:
    """Per-generation scoped-VMEM limit (v7x has only 64 MiB physical per TC)."""
    kind = ""
    try:
        kind = jax.devices()[0].device_kind.lower()
    except Exception:
        pass
    if "v7" in kind:
        return 48 * 1024 * 1024
    if "v5" in kind or "v6" in kind:
        return 96 * 1024 * 1024
    return 32 * 1024 * 1024


def _cnn_avg_kernel(x_ref, w1_ref, wf_ref, bf_ref, out_ref):
    """One batch tile of the fused forward pass.

    x_ref  : (TB, L_out_pad, Cin*K+1)  im2col patches + constant-1 bias column
    w1_ref : (Cin*K+1, Cout)           Conv1d weight (im2col layout), b1 as last row
    wf_ref : (Cout, Nt_pad)            fused (w2.T @ avg) / L_out  (f32, lane padded)
    bf_ref : (1, Nt_pad)               fused b2 @ avg              (f32, lane padded)
    out_ref: (TB, Nt_pad)
    """
    tb, l_out_pad, cink1 = x_ref.shape
    cout = w1_ref.shape[1]

    # Conv1d(valid) + bias as ONE im2col matmul on the MXU.  L_out_pad is a
    # sublane multiple, so this reshape is a layout no-op (no relayout copy).
    x2 = x_ref[...].reshape(tb * l_out_pad, cink1)
    conv = jnp.dot(x2, w1_ref[...], preferred_element_type=jnp.float32)
    h = jnp.maximum(conv, 0.0)                                  # ReLU, f32

    # Length-sum (the mean's 1/L_out is folded into wf).  Padded L_out rows are
    # all-zero (including the bias column) so they contribute exactly 0 here.
    h_sum = h.reshape(tb, l_out_pad, cout).sum(axis=1)          # (TB, Cout), f32

    # Fused Linear head + track-group averaging, kept in f32 so the f32
    # accumulation in h_sum is never downcast.
    out = jnp.dot(h_sum, wf_ref[...], preferred_element_type=jnp.float32) + bf_ref[...]
    out_ref[...] = out.astype(out_ref.dtype)


def prepare_cnn_average_params(w1, b1, w2, b2, avg, *, l_out,
                               compute_dtype=jnp.float32):
    """One-time weight prep (hoisted out of the per-call path)."""
    Cout, Cin, K = w1.shape
    T, Nt = avg.shape

    # Conv weight in im2col layout (row index = c*K + k); bias folded as last row.
    w1_mat = jnp.asarray(w1, jnp.float32).reshape(Cout, Cin * K).T          # (Cin*K, Cout)
    w1_mat = jnp.concatenate(
        [w1_mat, jnp.asarray(b1, jnp.float32).reshape(1, Cout)], axis=0)    # (Cin*K+1, Cout)
    w1_mat = w1_mat.astype(compute_dtype)

    # Mean-pool scale + Linear head + track-group averaging fused into one matrix.
    wf = (jnp.asarray(w2, jnp.float32).T @ jnp.asarray(avg, jnp.float32)) / l_out  # (Cout, Nt)
    bf = (jnp.asarray(b2, jnp.float32) @ jnp.asarray(avg, jnp.float32)).reshape(1, Nt)

    # Lane-dense output: pad Nt to a multiple of 128 (zeros), slice back after.
    Nt_pad = _round_up(Nt, 128)
    if Nt_pad != Nt:
        wf = jnp.pad(wf, ((0, 0), (0, Nt_pad - Nt)))
        bf = jnp.pad(bf, ((0, 0), (0, Nt_pad - Nt)))

    return dict(w1_mat=w1_mat, wf=wf.astype(jnp.float32), bf=bf.astype(jnp.float32),
                Cin=Cin, K=K, Cout=Cout, Nt=Nt, Nt_pad=Nt_pad,
                compute_dtype=jnp.dtype(compute_dtype))


def cnn_average_forward(x_ncl, params, *, batch_tile=512):
    """x_ncl: (B, Cin, L) PyTorch-style NCL input.  Returns (B, Nt) float32."""
    B, Cin, L = x_ncl.shape
    K, Cout = params["K"], params["Cout"]
    Nt, Nt_pad = params["Nt"], params["Nt_pad"]
    cdt = params["compute_dtype"]
    assert Cin == params["Cin"]
    L_out = L - K + 1

    # ---- per-call input prep (cheap XLA ops) --------------------------------
    # im2col patches: patches[b, l, c*K + k] = x[b, c, l + k], plus a trailing
    # constant-1 column that carries the folded conv bias.
    patches = jnp.stack([x_ncl[:, :, k:k + L_out] for k in range(K)], axis=-1)
    patches = jnp.transpose(patches, (0, 2, 1, 3)).reshape(B, L_out, Cin * K)
    patches = jnp.concatenate(
        [patches, jnp.ones((B, L_out, 1), patches.dtype)], axis=-1)   # (B, L_out, Cin*K+1)

    # Pad L_out to a sublane multiple (8 f32 / 16 bf16) with ZERO rows so the
    # in-kernel reshapes are layout no-ops; zero rows (incl. the bias column)
    # contribute 0 after ReLU so the length-sum stays exact.
    sub = 16 if cdt == jnp.dtype(jnp.bfloat16) else 8
    L_out_pad = _round_up(L_out, sub)
    if L_out_pad != L_out:
        patches = jnp.pad(patches, ((0, 0), (0, L_out_pad - L_out), (0, 0)))
    patches = patches.astype(cdt)
    CinK1 = Cin * K + 1

    # ---- batch-tiled grid ----------------------------------------------------
    TB = min(_round_up(batch_tile, 8), _round_up(B, 8))
    B_pad = _round_up(B, TB)
    # Prefer >=2 grid steps so the "parallel" batch axis shards across v7x's
    # two TensorCores (and the pipeline has steps to overlap).
    if B_pad // TB < 2 and TB >= 16:
        TB = _round_up((TB + 1) // 2, 8)
        B_pad = _round_up(B, TB)
    if B_pad != B:
        # Padded batch rows are all-zero -> they only compute bf; sliced off below.
        patches = jnp.pad(patches, ((0, B_pad - B), (0, 0), (0, 0)))
    n_steps = B_pad // TB

    patch_spec_kwargs = {}
    if n_steps >= 3:
        patch_spec_kwargs["pipeline_mode"] = pl.Buffered(3)   # deeper DMA pipeline
    patches_spec = pl.BlockSpec((TB, L_out_pad, CinK1), lambda i: (i, 0, 0),
                                **patch_spec_kwargs)

    out = pl.pallas_call(
        _cnn_avg_kernel,
        out_shape=jax.ShapeDtypeStruct((B_pad, Nt_pad), jnp.float32),
        grid_spec=pltpu.PrefetchScalarGridSpec(
            num_scalar_prefetch=0,
            grid=(n_steps,),
            in_specs=[
                patches_spec,                                    # patches tile (pipelined)
                pl.BlockSpec((CinK1, Cout), lambda i: (0, 0)),   # conv weight (+bias row), resident
                pl.BlockSpec((Cout, Nt_pad), lambda i: (0, 0)),  # fused head, resident
                pl.BlockSpec((1, Nt_pad), lambda i: (0, 0)),     # fused bias, resident
            ],
            out_specs=pl.BlockSpec((TB, Nt_pad), lambda i: (i, 0)),
        ),
        compiler_params=pltpu.CompilerParams(
            dimension_semantics=("parallel",),                   # megacore on v7x
            vmem_limit_bytes=_vmem_limit_bytes(),
        ),
    )(patches, params["w1_mat"], params["wf"], params["bf"])

    return out[:B, :Nt]


def _reference_forward(x_ncl, w1, b1, w2, b2, tracks):
    """Pure-JAX reference mimicking the PyTorch module exactly."""
    B, Cin, L = x_ncl.shape
    Cout, _, K = w1.shape
    L_out = L - K + 1
    conv = jnp.zeros((B, Cout, L_out), jnp.float32)
    for k in range(K):
        conv = conv + jnp.einsum('bcl,oc->bol', x_ncl[:, :, k:k + L_out], w1[:, :, k])
    conv = conv + b1[None, :, None]
    h = jnp.maximum(conv, 0.0).mean(axis=2)                   # (B, Cout)
    pred = h @ w2.T + b2[None, :]                             # (B, T)
    cols = [pred[:, jnp.array(tup)].mean(axis=1, keepdims=True) for tup in tracks]
    return jnp.concatenate(cols, axis=1)                      # (B, Nt)


if __name__ == "__main__":
    # Small shapes consistent with a genomics cnn_multi: one-hot-ish seq (B, 4, L)
    B, Cin, L = 2, 4, 16
    Cout, K = 8, 5
    T = 6                                   # total output tracks of the model
    tracks = [[0, 1, 2], [3, 4], [5]]       # groups averaged by the wrapper
    Nt = len(tracks)
    L_out = L - K + 1

    key = jax.random.PRNGKey(0)
    kx, kw1, kb1, kw2, kb2 = jax.random.split(key, 5)

    x = jax.random.normal(kx, (B, Cin, L), jnp.float32)
    w1 = jax.random.normal(kw1, (Cout, Cin, K), jnp.float32) * 0.1
    b1 = jax.random.normal(kb1, (Cout,), jnp.float32) * 0.1
    w2 = jax.random.normal(kw2, (T, Cout), jnp.float32) * 0.1
    b2 = jax.random.normal(kb2, (T,), jnp.float32) * 0.1

    # Track-group averaging matrix (T, Nt): column g averages pred[:, tracks[g]]
    avg = jnp.zeros((T, Nt), jnp.float32)
    for g, tup in enumerate(tracks):
        for t in tup:
            avg = avg.at[t, g].set(1.0 / len(tup))

    ref = _reference_forward(x, w1, b1, w2, b2, tracks)

    # f32 path (tight check).  Weight prep done ONCE and reused across calls.
    params_f32 = prepare_cnn_average_params(w1, b1, w2, b2, avg, l_out=L_out)
    out = jax.block_until_ready(cnn_average_forward(x, params_f32))
    assert out.shape == (B, Nt)
    assert jnp.allclose(out, ref, atol=1e-5, rtol=1e-5), (out, ref)

    # bf16-patch path (halves HBM traffic of the dominant operand; f32 accumulation
    # and f32 head matmul retained).  Loose tolerance for bf16 rounding.
    params_bf16 = prepare_cnn_average_params(w1, b1, w2, b2, avg, l_out=L_out,
                                             compute_dtype=jnp.bfloat16)
    out_bf16 = jax.block_until_ready(cnn_average_forward(x, params_bf16))
    assert out_bf16.shape == (B, Nt)
    assert jnp.allclose(out_bf16, ref, atol=3e-2, rtol=3e-2), (out_bf16, ref)

    print("KERNEL_OK")
</pallas_src>

<mosaic_0001>
module attributes {stable_mosaic.version = 11 : i64} {
  func.func @_cnn_avg_kernel(%arg0: i32, %arg1: memref<8x16x21xf32, #tpu.memory_space<vmem>>, %arg2: memref<21x8xf32, #tpu.memory_space<vmem>>, %arg3: memref<8x128xf32, #tpu.memory_space<vmem>>, %arg4: memref<1x128xf32, #tpu.memory_space<vmem>>, %arg5: memref<8x128xf32, #tpu.memory_space<vmem>>) attributes {dimension_semantics = [#tpu.dimension_semantics<parallel>], iteration_bounds = array<i64: 1>, scalar_prefetch = 0 : i64, scratch_operands = 0 : i64, tpu.core_type = #tpu.core_type<tc>, window_params = [{transform_indices = @transform_0, window_bounds = array<i64: 8, 16, 21>}, {pipeline_mode = #tpu.pipeline_mode<synchronous>, transform_indices = @transform_1, window_bounds = array<i64: 21, 8>}, {pipeline_mode = #tpu.pipeline_mode<synchronous>, transform_indices = @transform_2, window_bounds = array<i64: 8, 128>}, {pipeline_mode = #tpu.pipeline_mode<synchronous>, transform_indices = @transform_3, window_bounds = array<i64: 1, 128>}, {transform_indices = @transform_4, window_bounds = array<i64: 8, 128>}]} {
    %c0 = arith.constant 0 : index
    %c0_0 = arith.constant 0 : index
    %c0_1 = arith.constant 0 : index
    %0 = vector.load %arg1[%c0, %c0_0, %c0_1] : memref<8x16x21xf32, #tpu.memory_space<vmem>>, vector<8x16x21xf32>
    %1 = vector.shape_cast %0 : vector<8x16x21xf32> to vector<128x21xf32>
    %c0_2 = arith.constant 0 : index
    %c0_3 = arith.constant 0 : index
    %2 = vector.load %arg2[%c0_2, %c0_3] : memref<21x8xf32, #tpu.memory_space<vmem>>, vector<21x8xf32>
    %cst = arith.constant dense<0.000000e+00> : vector<128x8xf32>
    %3 = tpu.matmul %1, %2, %cst {dimension_numbers = #tpu.dot_dimension_numbers<[1], [0], [0], [1], [0, 0, 1, 1], [], []>} : vector<128x21xf32>, vector<21x8xf32>, vector<128x8xf32> -> vector<128x8xf32>
    %cst_4 = arith.constant 0.000000e+00 : f32
    %4 = vector.broadcast %cst_4 : f32 to vector<128x8xf32>
    %5 = arith.maximumf %3, %4 : vector<128x8xf32>
    %6 = vector.shape_cast %5 : vector<128x8xf32> to vector<8x16x8xf32>
    %cst_5 = arith.constant dense<0.000000e+00> : vector<8x8xf32>
    %7 = vector.multi_reduction <add>, %6, %cst_5 [1] : vector<8x16x8xf32> to vector<8x8xf32>
    %c0_6 = arith.constant 0 : index
    %c0_7 = arith.constant 0 : index
    %8 = vector.load %arg3[%c0_6, %c0_7] : memref<8x128xf32, #tpu.memory_space<vmem>>, vector<8x128xf32>
    %cst_8 = arith.constant dense<0.000000e+00> : vector<8x128xf32>
    %9 = tpu.matmul %7, %8, %cst_8 {dimension_numbers = #tpu.dot_dimension_numbers<[1], [0], [0], [1], [0, 0, 1, 1], [], []>} : vector<8x8xf32>, vector<8x128xf32>, vector<8x128xf32> -> vector<8x128xf32>
    %c0_9 = arith.constant 0 : index
    %c0_10 = arith.constant 0 : index
    %10 = vector.load %arg4[%c0_9, %c0_10] : memref<1x128xf32, #tpu.memory_space<vmem>>, vector<1x128xf32>
    %11 = vector.broadcast %10 : vector<1x128xf32> to vector<8x128xf32>
    %12 = arith.addf %9, %11 : vector<8x128xf32>
    %c0_11 = arith.constant 0 : index
    %c0_12 = arith.constant 0 : index
    %13 = vector.load %arg5[%c0_11, %c0_12] : memref<8x128xf32, #tpu.memory_space<vmem>>, vector<8x128xf32>
    tpu.vector_store %arg5[%c0_11, %c0_12], %12 {strides = array<i32>} : memref<8x128xf32, #tpu.memory_space<vmem>>, vector<8x128xf32>,
    return
  }
  func.func @transform_0(%arg0: i32) -> (i32, i32, i32) {
    %c0_i32 = arith.constant 0 : i32
    %c0_i32_0 = arith.constant 0 : i32
    %c0_i32_1 = arith.constant 0 : i32
    return %arg0, %c0_i32, %c0_i32_0 : i32, i32, i32
  }
  func.func @transform_1(%arg0: i32) -> (i32, i32) {
    %c0_i32 = arith.constant 0 : i32
    %c0_i32_0 = arith.constant 0 : i32
    %c0_i32_1 = arith.constant 0 : i32
    return %c0_i32, %c0_i32_0 : i32, i32
  }
  func.func @transform_2(%arg0: i32) -> (i32, i32) {
    %c0_i32 = arith.constant 0 : i32
    %c0_i32_0 = arith.constant 0 : i32
    %c0_i32_1 = arith.constant 0 : i32
    return %c0_i32, %c0_i32_0 : i32, i32
  }
  func.func @transform_3(%arg0: i32) -> (i32, i32) {
    %c0_i32 = arith.constant 0 : i32
    %c0_i32_0 = arith.constant 0 : i32
    %c0_i32_1 = arith.constant 0 : i32
    return %c0_i32, %c0_i32_0 : i32, i32
  }
  func.func @transform_4(%arg0: i32) -> (i32, i32) {
    %c0_i32 = arith.constant 0 : i32
    %c0_i32_0 = arith.constant 0 : i32
    return %arg0, %c0_i32 : i32, i32
  }
}

</mosaic_0001>

<bundles_post_ra>
// kernel: tpu_custom_call.1
= control target key start
LH: loop header
LB: loop body
LE: loop exit
PB: predicated region body
PF: predicated region fallthrough
CT: control target
= control target key end

     0   :  { %9 = vsyncpa [#allocation3], 0  ;;  %s697_s0 = inlined_call_operand.hbm [shape: f32[8,16,21], index: 0, kind: input, shape index: {}]   ;;  %s698_s1 = inlined_call_operand.vmem [shape: f32[21,8], index: 1, kind: input, shape index: {}]   ;;  %s699_s2 = inlined_call_operand.vmem [shape: f32[8,128], index: 2, kind: input, shape index: {}]   ;;  %s700_s3 = inlined_call_operand.vmem [shape: f32[1,128], index: 3, kind: input, shape index: {}]   ;;  %s701_s4 = inlined_call_operand.hbm [shape: f32[8,128], index: 4, kind: output, shape index: {}]  }
   0x1   :  { %10 = vsyncpa [#allocation4], 0  ;;  %s593_s15 = smov [#allocation2]   ;;  %s545_s19 = scalar_lea.hbm %s697_s0, 2048 }
   0x2   :  { %s16_s16 = sshll.u32 %s593_s15, 4  ;;  %p546_p0 = scmp.ne.s32.totalorder %s697_s0, %s545_s19  ;;  %s17_s16 = int_to_ptr.vmem [resolvable:$true] %s16_s16 }
   0x3   :  { %p549_p1 = scmp.lt.u32.totalorder %s545_s19, %s697_s0 }
   0x5   :  { %p551_p2 = pnand %p549_p1, %p546_p0 }
   0x7   :  { %554 = shalt.err (!%p551_p2)
}
   0x8   :  { %s555_s24 = scalar_lea.vmem %s17_s16, 2048  ;;  %p560_p4 = scmp.lt.s32.totalorder %s17_s16, %s17_s16 }
   0x9   :  { %p556_p3 = scmp.ne.s32.totalorder %s17_s16, %s555_s24  ;;  %p561_p5 = scmp.lt.s32.totalorder %s555_s24, %s555_s24 }
   0xb   :  { %p562_p6 = por %p561_p5, %p560_p4 }
   0xd   :  { %p563_p7 = pnand %p562_p6, %p556_p3 }
   0xf   :  { %566 = shalt.err (!%p563_p7)
}
  0x10   :  { %s594_s25 = smov 128   ;;  %s595_s26 = smov 8  }
  0x11   :  { %22 = dma.hbm_to_vmem [thread:$0]  %s697_s0, 2048, %s17_s16, [#allocation3], %s594_s25, %s594_s25, %s595_s26  }
  0x12   :  { %589 = dma.done.wait [#allocation3], 2048  }
  0x13   :  { %590 = vsyncadd [#allocation3], 4294965248  ;;  %vm51_vm0 = vcmask 171008   ;;  %v48_v0 = vld [vmem:[%s698_s1] sm:$0xff]  ;;  %v49_v1 = vld [vmem:[%s698_s1 + $0x8] sm:$0xff]  ;;  %vm100_vm1 = vcmask 1044480  }
  0x14   :  { %v531_v2 = vpack.c.bf16 %v49_v1, %v48_v0  ;;  %v32_v3 = vld [vmem:[#allocation2] sm:$0xff]  ;;  %v50_v4 = vld [vmem:[%s698_s1 + $0x10] sm:$0x1f]  ;;  %v33_v6 = vld [vmem:[#allocation2 + $0x8] sm:$0xff]  ;;  %v596_v21 = vmov 0.0   ;;  %vm597_vm2 = vmmov 0  }
  0x15   :  { %502 = vmatprep.mubr.msk.f32.mxu0 %vm51_vm0, %v32_v3  ;;  %v42_v5 = vld [vmem:[#allocation2 + $0x50] sm:$0xff]  ;;  %v43_v7 = vld [vmem:[#allocation2 + $0x58] sm:$0xff]  ;;  %v44_v9 = vld [vmem:[#allocation2 + $0x60] sm:$0xff]  ;;  %vm265_vm3 = vcmask 64512   ;;  %vm354_vm4 = vcmask 1041409   ;;  %vm356_vm5 = vcmask 1042434  }
  0x16   :  { %532 = vmatprep.subr.bf16.mxu0 %v531_v2  ;;  %535 = vmatprep.subr.bf16.mxu1 %v531_v2  ;;  %v34_v8 = vld [vmem:[#allocation2 + $0x10] sm:$0xff]  ;;  %v35_v10 = vld [vmem:[#allocation2 + $0x18] sm:$0xff]  ;;  %v45_v11 = vld [vmem:[#allocation2 + $0x68] sm:$0xff]  ;;  %vm358_vm6 = vcmask 1043459   ;;  %vm360_vm7 = vcmask 1044484   ;;  %vm362_vm8 = vcmask 1045509  }
  0x17   :  { %534 = vmatpush3.bf16.msra.mxu0 %v531_v2  ;;  %537 = vmatpush3.bf16.msra.mxu1 %v531_v2  ;;  %v36_v12 = vld [vmem:[#allocation2 + $0x20] sm:$0xff]  ;;  %v46_v13 = vld [vmem:[#allocation2 + $0x70] sm:$0xff]  ;;  %v37_v14 = vld [vmem:[#allocation2 + $0x28] sm:$0xff]  ;;  %vm364_vm9 = vcmask 1046534   ;;  %vm366_vm10 = vcmask 1047559   ;;  %s598_s10 = smov [#allocation5]  }
  0x18   :  { %500 = vmatprep.subr.msk.mxu0 %vm100_vm1, %v50_v4  ;;  %536 = vmatprep.subr.msk.mxu1 %vm100_vm1, %v50_v4  ;;  %v47_v15 = vld [vmem:[#allocation2 + $0x78] sm:$0xff]  ;;  %v38_v16 = vld [vmem:[#allocation2 + $0x30] sm:$0xff]  ;;  %v40_v18 = vld [vmem:[#allocation2 + $0x40] sm:$0xff]  ;;  %s447_s11 = sshll.u32 %s598_s10, 4  ;;  %s448_s11 = int_to_ptr.vmem [resolvable:$true] %s447_s11 }
  0x19   :  { %517 = vmatprep.mubr.msk.f32.mxu1 %vm51_vm0, %v42_v5  ;;  %v39_v17 = vld [vmem:[#allocation2 + $0x38] sm:$0xff]  ;;  %v41_v19 = vld [vmem:[#allocation2 + $0x48] sm:$0xff]  ;;  %v338_v20 = vld [vmem:[%s699_s2] sm:$0xff]  ;;  %s567_s12 = scalar_lea.vmem %s448_s11, 128  ;;  %p572_p9 = scmp.lt.s32.totalorder %s448_s11, %s448_s11 }
  0x1a   :  { %p568_p8 = scmp.ne.s32.totalorder %s448_s11, %s567_s12  ;;  %p573_p10 = scmp.lt.s32.totalorder %s567_s12, %s567_s12 }
  0x1b   :  { %501 = vmatpush3.msk.msra.mxu0 %vm100_vm1, %v50_v4  ;;  %538 = vmatpush3.msk.msra.mxu1 %vm100_vm1, %v50_v4 }
  0x1c   :  { %503 = vmatmul.mubr.msk.f32.vlgmr.msra.gmra.mrb[0].mxu0 %vm51_vm0, %v33_v6  ;;  %518 = vmatmul.mubr.msk.f32.vlgmr.msra.gmra.mrb[0].mxu1 %vm51_vm0, %v43_v7  ;;  %p574_p11 = por %p573_p10, %p572_p9 }
  0x1d   :  { %505 = vmatprep.mubr.msk.f32.mxu0 %vm51_vm0, %v34_v8  ;;  %520 = vmatprep.mubr.msk.f32.mxu1 %vm51_vm0, %v44_v9 }
  0x1e   :  { %526 = vmatprep.subr.mxu1 %v596_v21  ;;  %p575_p12 = pnand %p574_p11, %p568_p8 }
  0x1f   :  { %527 = vmatpush3.msra.mxu1 %v338_v20 }
  0x20   :  { %506 = vmatmul.mubr.msk.f32.gmra.mrb[2].mxu0 %vm51_vm0, %v35_v10  ;;  %521 = vmatmul.mubr.msk.f32.gmra.mrb[2].mxu1 %vm51_vm0, %v45_v11 }
  0x21   :  { %508 = vmatprep.mubr.msk.f32.mxu0 %vm51_vm0, %v36_v12  ;;  %523 = vmatprep.mubr.msk.f32.mxu1 %vm51_vm0, %v46_v13 }
  0x24   :  { %509 = vmatmul.mubr.msk.f32.gmra.mrb[4].mxu0 %vm51_vm0, %v37_v14  ;;  %524 = vmatmul.mubr.msk.f32.gmra.mrb[4].mxu1 %vm51_vm0, %v47_v15 }
  0x25   :  { %511 = vmatprep.mubr.msk.f32.mxu0 %vm51_vm0, %v38_v16  ;;  %528 = vmatprep.mubr.msk.f32.mxu1 %vm597_vm2, %v596_v21 }
  0x28   :  { %512 = vmatmul.mubr.msk.f32.gmra.mrb[6].mxu0 %vm51_vm0, %v39_v17 }
  0x29   :  { %514 = vmatprep.mubr.msk.f32.mxu0 %vm51_vm0, %v40_v18 }
  0x2c   :  { %515 = vmatmul.mubr.msk.f32.gmra.mrb[8].mxu0 %vm51_vm0, %v41_v19 }
  0xef   :  { %v504_v22 = vpop.f32.mrb[0].mxu0  ;;  %v519_v23 = vpop.f32.mrb[0].mxu1 }
  0xf0   :  { %v250_v24 = vmax.f32 %v504_v22, 0.0  ;;  %v170_v25 = vpop.f32.mrb[1].mxu0  ;;  %v260_v26 = vmax.f32 %v519_v23, 0.0  ;;  %v220_v27 = vpop.f32.mrb[1].mxu1 }
  0xf1   :  { %v249_v28 = vmax.f32 %v170_v25, 0.0  ;;  %v259_v29 = vmax.f32 %v220_v27, 0.0 }
  0xf2   :  { %v267_v30 = vsel %vm265_vm3, %v250_v24, 0.0  ;;  %v312_v31 = vsel %vm265_vm3, %v260_v26, 0.0 }
  0xf3   :  { %v266_v32 = vsel %vm265_vm3, %v249_v28, 0.0  ;;  %v507_v33 = vpop.f32.mrb[2].mxu0  ;;  %v311_v34 = vsel %vm265_vm3, %v259_v29, 0.0  ;;  %v522_v35 = vpop.f32.mrb[2].mxu1 }
  0xf4   :  { %v268_v36 = vadd.f32 %v267_v30, %v266_v32  ;;  %v252_v37 = vmax.f32 %v507_v33, 0.0  ;;  %v180_v38 = vpop.f32.mrb[3].mxu0  ;;  %v313_v39 = vadd.f32 %v312_v31, %v311_v34  ;;  %v262_v40 = vmax.f32 %v522_v35, 0.0  ;;  %v230_v41 = vpop.f32.mrb[3].mxu1 }
  0xf5   :  { %v251_v42 = vmax.f32 %v180_v38, 0.0  ;;  %v261_v43 = vmax.f32 %v230_v41, 0.0 }
  0xf6   :  { %v269_v44 = vrot.slane %v268_v36, 4  ;;  %v276_v45 = vsel %vm265_vm3, %v252_v37, 0.0  ;;  %v321_v46 = vsel %vm265_vm3, %v262_v40, 0.0  ;;  %v314_v11 = vrot.slane %v313_v39, 4 }
  0xf7   :  { %v275_v47 = vsel %vm265_vm3, %v251_v42, 0.0  ;;  %v510_v48 = vpop.f32.mrb[4].mxu0  ;;  %v320_v49 = vsel %vm265_vm3, %v261_v43, 0.0  ;;  %v525_v50 = vpop.f32.mrb[4].mxu1 }
  0xf8   :  { %v270_v51 = vadd.f32 %v269_v44, %v268_v36  ;;  %v277_v52 = vadd.f32 %v276_v45, %v275_v47  ;;  %v254_v53 = vmax.f32 %v510_v48, 0.0  ;;  %v190_v54 = vpop.f32.mrb[5].mxu0  ;;  %v240_v55 = vpop.f32.mrb[5].mxu1  ;;  %v322_v57 = vadd.f32 %v321_v46, %v320_v49 }
  0xf9   :  { %v253_v56 = vmax.f32 %v190_v54, 0.0  ;;  %v264_v58 = vmax.f32 %v525_v50, 0.0  ;;  %v263_v59 = vmax.f32 %v240_v55, 0.0  ;;  %v315_v25 = vadd.f32 %v314_v11, %v313_v39 }
  0xfa   :  { %v271_v60 = vrot.slane %v270_v51, 2  ;;  %v278_v61 = vrot.slane %v277_v52, 4  ;;  %v285_v62 = vsel %vm265_vm3, %v254_v53, 0.0  ;;  %v323_v14 = vrot.slane %v322_v57, 4 }
  0xfb   :  { %v284_v63 = vsel %vm265_vm3, %v253_v56, 0.0  ;;  %v513_v0 = vpop.f32.mrb[6].mxu0  ;;  %v330_v1 = vsel %vm265_vm3, %v264_v58, 0.0  ;;  %v329_v2 = vsel %vm265_vm3, %v263_v59, 0.0  ;;  %v316_v40 = vrot.slane %v315_v25, 2 }
  0xfc   :  { %v272_v3 = vadd.f32 %v271_v60, %v270_v51  ;;  %v279_v4 = vadd.f32 %v278_v61, %v277_v52  ;;  %v286_v5 = vadd.f32 %v285_v62, %v284_v63  ;;  %v200_v6 = vpop.f32.mrb[7].mxu0  ;;  %v256_v7 = vmax.f32 %v513_v0, 0.0 }
  0xfd   :  { %v255_v8 = vmax.f32 %v200_v6, 0.0  ;;  %v331_v9 = vadd.f32 %v330_v1, %v329_v2  ;;  %v324_v29 = vadd.f32 %v323_v14, %v322_v57  ;;  %v317_v48 = vadd.f32 %v316_v40, %v315_v25 }
  0xfe   :  { %v280_v10 = vrot.slane %v279_v4, 2  ;;  %v287_v12 = vrot.slane %v286_v5, 4  ;;  %v273_v13 = vrot.slane %v272_v3, 1  ;;  %v294_v15 = vsel %vm265_vm3, %v256_v7, 0.0 }
  0xff   :  { %v293_v16 = vsel %vm265_vm3, %v255_v8, 0.0  ;;  %v516_v17 = vpop.f32.mrb[8].mxu0  ;;  %v332_v20 = vrot.slane %v331_v9, 4  ;;  %v325_v39 = vrot.slane %v324_v29, 2  ;;  %v318_v56 = vrot.slane %v317_v48, 1 }
 0x100   :  { %v281_v18 = vadd.f32 %v280_v10, %v279_v4  ;;  %v288_v19 = vadd.f32 %v287_v12, %v286_v5  ;;  %v210_v21 = vpop.f32.mrb[9].mxu0  ;;  %v295_v22 = vadd.f32 %v294_v15, %v293_v16  ;;  %v258_v23 = vmax.f32 %v516_v17, 0.0  ;;  %v473_v5 = vld [vmem:[%s700_s3] ss:$0 sm:$0xff] }
 0x101   :  { %v257_v27 = vmax.f32 %v210_v21, 0.0  ;;  %v274_v28 = vadd.f32 %v273_v13, %v272_v3  ;;  %v333_v34 = vadd.f32 %v332_v20, %v331_v9  ;;  %v326_v50 = vadd.f32 %v325_v39, %v324_v29 }
 0x102   :  { %v282_v24 = vrot.slane %v281_v18, 1  ;;  %v289_v26 = vrot.slane %v288_v19, 2  ;;  %v296_v30 = vrot.slane %v295_v22, 4  ;;  %v303_v31 = vsel %vm265_vm3, %v258_v23, 0.0 }
 0x103   :  { %v302_v35 = vsel %vm265_vm3, %v257_v27, 0.0  ;;  %v334_v45 = vrot.slane %v333_v34, 2  ;;  %v327_v57 = vrot.slane %v326_v50, 1  ;;  %v319_v62 = vadd.f32 %v318_v56, %v317_v48 }
 0x104   :  { %v283_v32 = vadd.f32 %v282_v24, %v281_v18  ;;  %v290_v33 = vadd.f32 %v289_v26, %v288_v19  ;;  %v297_v36 = vadd.f32 %v296_v30, %v295_v22  ;;  %v304_v37 = vadd.f32 %v303_v31, %v302_v35 }
 0x105   :  { %v335_v53 = vadd.f32 %v334_v45, %v333_v34  ;;  %v328_v63 = vadd.f32 %v327_v57, %v326_v50 }
 0x106   :  { %v355_v38 = vsel %vm354_vm4, %v283_v32, %v274_v28  ;;  %v291_v41 = vrot.slane %v290_v33, 1  ;;  %v298_v42 = vrot.slane %v297_v36, 2  ;;  %v305_v43 = vrot.slane %v304_v37, 4 }
 0x107   :  { %v336_v60 = vrot.slane %v335_v53, 1 }
 0x108   :  { %v292_v44 = vadd.f32 %v291_v41, %v290_v33  ;;  %v299_v46 = vadd.f32 %v298_v42, %v297_v36  ;;  %v306_v47 = vadd.f32 %v305_v43, %v304_v37 }
 0x109   :  { %v337_v1 = vadd.f32 %v336_v60, %v335_v53 }
 0x10a   :  { %v357_v49 = vsel %vm356_vm5, %v292_v44, %v355_v38  ;;  %v300_v51 = vrot.slane %v299_v46, 1  ;;  %v307_v52 = vrot.slane %v306_v47, 2 }
 0x10c   :  { %v301_v54 = vadd.f32 %v300_v51, %v299_v46  ;;  %v308_v55 = vadd.f32 %v307_v52, %v306_v47 }
 0x10e   :  { %v359_v58 = vsel %vm358_vm6, %v301_v54, %v357_v49  ;;  %v309_v59 = vrot.slane %v308_v55, 1 }
 0x110   :  { %v310_v61 = vadd.f32 %v309_v59, %v308_v55 }
 0x112   :  { %v361_v0 = vsel %vm360_vm7, %v310_v61, %v359_v58 }
 0x113   :  { %v363_v2 = vsel %vm362_vm8, %v319_v62, %v361_v0 }
 0x114   :  { %v365_v3 = vsel %vm364_vm9, %v328_v63, %v363_v2 }
 0x115   :  { %v367_v4 = vsel %vm366_vm10, %v337_v1, %v365_v3 }
 0x116   :  { %529 = vmatmul.mubr.msk.f32.vlgmr.msra.gmra.mrb[6].mxu1 %vm265_vm3, %v367_v4 }
 0x1e9   :  { %v436_v6 = vpop.f32.mrb[6].mxu1 }
 0x1ea   :  { %v437_v7 = vadd.f32 %v473_v5, %v436_v6  ;;  %v530_v8 = vpop.f32.mrb[7].mxu1 }
 0x1ec   :  { %440 = vst [vmem:[#allocation5] sm:$0xff] %v437_v7 }
 0x1ed   :  { %578 = shalt.err (!%p575_p12)
}
 0x1ee   :  { %s579_s15 = scalar_lea.hbm %s701_s4, 128 }
 0x1ef   :  { %p580_p13 = scmp.ne.s32.totalorder %s701_s4, %s579_s15  ;;  %p583_p0 = scmp.lt.u32.totalorder %s579_s15, %s701_s4 }
 0x1f1   :  { %p585_p1 = pnand %p583_p0, %p580_p13 }
 0x1f3   :  { %588 = shalt.err (!%p585_p1)
}
 0x1f4   :  { %450 = dma.vmem_to_hbm [thread:$0]  %s448_s11, 128, %s701_s4, [#allocation4]  }
 0x1f5   :  { %591 = dma.done.wait [#allocation4], 128  }
 0x1f6   :  { %592 = vsyncadd [#allocation4], 4294967168 }
 0x1f7   :  { %454 = vsyncpa [#allocation3], 1 }
 0x1f8   :  { %455 = vsyncpa [#allocation4], 1 }

</bundles_post_ra>
